<compile_context>
chip_gen: v6e
topology: v6e:2x2x1
jax: 0.10.0
libtpu: 0.0.40
codegen_flags: <defaults>
</compile_context>

<pallas_src>
import functools

import jax
import jax.numpy as jnp
from jax.experimental import pallas as pl
from jax.experimental.pallas import tpu as pltpu

_LANE = 128


def _channel_attention_kernel(x_ref, w1_ref, w2_ref, out_ref,
                              sum_acc, max_acc, *, hw, hw_tile, needs_mask):
    """One (batch b, spatial tile k) grid step.

    x_ref  : (1, C, hw_tile)  current spatial tile of one batch element
    w1_ref : (Cr, C) f32      first 1x1-conv weight
    w2_ref : (C, Cr) f32      second 1x1-conv weight
    out_ref: (1, C, 1)        sigmoid(fc(avg) + fc(max)) for this batch element
    sum_acc: (C, 1) f32       running spatial sum  (channel on sublanes)
    max_acc: (C, 1) f32       running spatial max  (channel on sublanes)
    """
    k = pl.program_id(1)
    n_k = pl.num_programs(1)

    @pl.when(k == 0)
    def _init():
        sum_acc[...] = jnp.zeros_like(sum_acc)
        max_acc[...] = jnp.full_like(max_acc, -jnp.inf)

    x = x_ref[0]  # (C, hw_tile), input dtype (no blanket f32 materialization)

    def _accumulate(masked):
        if masked:
            lane = jax.lax.broadcasted_iota(jnp.int32, x.shape, dimension=1)
            valid = (k * hw_tile + lane) < hw
            if jnp.issubdtype(x.dtype, jnp.floating):
                lowest = jnp.finfo(x.dtype).min
            else:
                lowest = jnp.iinfo(x.dtype).min
            x_sum = jnp.where(valid, x, jnp.zeros_like(x))
            x_max = jnp.where(valid, x, jnp.full_like(x, lowest))
        else:
            x_sum = x
            x_max = x
        # keepdims reduces keep channel on sublanes -> no per-tile relayout;
        # the bf16->f32 cast fuses into the accumulate.
        sum_acc[...] += jnp.sum(x_sum.astype(jnp.float32), axis=-1, keepdims=True)
        max_acc[...] = jnp.maximum(
            max_acc[...],
            jnp.max(x_max, axis=-1, keepdims=True).astype(jnp.float32))

    if needs_mask:
        # Only the last spatial tile is partial; keep the steady-state loop free
        # of the iota / compare / select work and the extra full-tile temporaries.
        @pl.when(k < n_k - 1)
        def _full_tile():
            _accumulate(False)

        @pl.when(k == n_k - 1)
        def _partial_tile():
            _accumulate(True)
    else:
        _accumulate(False)

    @pl.when(k == n_k - 1)
    def _epilogue():
        avg = sum_acc[...] * (1.0 / hw)     # (C, 1) f32
        mx = max_acc[...]                   # (C, 1) f32
        w1 = w1_ref[...]                    # (Cr, C) f32 (pre-cast in wrapper)
        w2 = w2_ref[...]                    # (C, Cr) f32
        # Shared MLP applied to both pooled vectors; channel stays on sublanes
        # throughout, so no relayout is needed before the (1, C, 1) store.
        h_avg = jnp.maximum(jnp.dot(w1, avg, preferred_element_type=jnp.float32), 0.0)
        h_max = jnp.maximum(jnp.dot(w1, mx, preferred_element_type=jnp.float32), 0.0)
        y = (jnp.dot(w2, h_avg, preferred_element_type=jnp.float32)
             + jnp.dot(w2, h_max, preferred_element_type=jnp.float32))  # (C, 1)
        out_ref[...] = jax.nn.sigmoid(y)[None, :, :].astype(out_ref.dtype)


def _default_tiling():
    """(tile_bytes, vmem_limit_bytes) chosen per TPU generation."""
    try:
        vmem = pltpu.get_tpu_info().vmem_capacity_bytes
    except Exception:
        vmem = 64 * 1024 * 1024  # conservative fallback, safe everywhere
    if vmem >= 128 * 1024 * 1024:                 # v5e / v6e (128 MiB VMEM)
        return 16 * 1024 * 1024, 96 * 1024 * 1024
    return 12 * 1024 * 1024, 48 * 1024 * 1024     # v7x (64 MiB VMEM)


def channel_attention(x, w1, w2, *, tile_bytes=None, vmem_limit_bytes=None):
    """x: (B, C, H, W) NCHW; w1: (Cr, C, 1, 1); w2: (C, Cr, 1, 1).

    Returns (B, C, 1, 1) attention weights, matching the PyTorch forward().
    """
    B, C, H, W = x.shape
    Cr = w1.shape[0]
    HW = H * W
    itemsize = jnp.dtype(x.dtype).itemsize

    default_tile, default_vmem = _default_tiling()
    tile_bytes = default_tile if tile_bytes is None else tile_bytes
    vmem_limit_bytes = default_vmem if vmem_limit_bytes is None else vmem_limit_bytes

    x_flat = x.reshape(B, C, HW)
    # Tiny 1x1-conv weights: reshape + pre-cast to f32 outside the kernel so the
    # epilogue does no per-batch casts / transposes.
    w1_2d = w1.reshape(Cr, C).astype(jnp.float32)
    w2_2d = w2.reshape(C, Cr).astype(jnp.float32)

    # Spatial tiling: single full-extent tile if the whole (C, HW) slab fits the
    # budget (typical CBAM shapes); otherwise the largest 128-lane multiple under
    # the budget, masking only the (possibly partial) last tile.
    slab_bytes = C * HW * itemsize
    if HW <= _LANE or slab_bytes <= tile_bytes:
        hw_tile = HW
    else:
        max_lanes = max(_LANE, (tile_bytes // (C * itemsize)) // _LANE * _LANE)
        hw_tile = min((HW // _LANE) * _LANE, max_lanes)
    n_tiles = pl.cdiv(HW, hw_tile)
    needs_mask = (n_tiles * hw_tile) != HW

    kernel = functools.partial(
        _channel_attention_kernel, hw=HW, hw_tile=hw_tile, needs_mask=needs_mask)

    cost = pl.CostEstimate(
        flops=2 * B * C * HW + 8 * B * C * Cr,
        transcendentals=B * C,
        bytes_accessed=B * C * HW * itemsize + 2 * 4 * C * Cr + B * C * itemsize,
    )

    out = pl.pallas_call(
        kernel,
        out_shape=jax.ShapeDtypeStruct((B, C, 1), x.dtype),
        grid=(B, n_tiles),
        in_specs=[
            pl.BlockSpec((1, C, hw_tile), lambda b, k: (b, 0, k)),
            pl.BlockSpec((Cr, C), lambda b, k: (0, 0)),
            pl.BlockSpec((C, Cr), lambda b, k: (0, 0)),
        ],
        out_specs=pl.BlockSpec((1, C, 1), lambda b, k: (b, 0, 0)),
        scratch_shapes=[
            pltpu.VMEM((C, 1), jnp.float32),  # running spatial sum
            pltpu.VMEM((C, 1), jnp.float32),  # running spatial max
        ],
        compiler_params=pltpu.CompilerParams(
            dimension_semantics=("parallel", "arbitrary"),
            vmem_limit_bytes=vmem_limit_bytes,
        ),
        cost_estimate=cost,
    )(x_flat, w1_2d, w2_2d)

    return out.reshape(B, C, 1, 1)


def channel_attention_ref(x, w1, w2):
    """Pure-JAX reference matching the PyTorch forward exactly."""
    B, C, H, W = x.shape
    Cr = w1.shape[0]
    avg = jnp.mean(x, axis=(2, 3))  # (B, C)
    mx = jnp.max(x, axis=(2, 3))    # (B, C)
    w1_2d = w1.reshape(Cr, C)
    w2_2d = w2.reshape(C, Cr)

    def fc(p):
        h = jnp.maximum(p @ w1_2d.T, 0.0)
        return h @ w2_2d.T

    out = jax.nn.sigmoid(fc(avg) + fc(mx))
    return out.reshape(B, C, 1, 1)


if __name__ == "__main__":
    key = jax.random.PRNGKey(0)
    kx, kw1, kw2 = jax.random.split(key, 3)

    # Small but consistent with the module: default ratio=16 requires C >= 16.
    B, C, H, W = 2, 64, 16, 16
    ratio = 16
    Cr = C // ratio

    x = jax.random.normal(kx, (B, C, H, W), dtype=jnp.float32)
    # Conv2d weight shape: (out_channels, in_channels, 1, 1), no bias.
    w1 = jax.random.normal(kw1, (Cr, C, 1, 1), dtype=jnp.float32) * 0.1
    w2 = jax.random.normal(kw2, (C, Cr, 1, 1), dtype=jnp.float32) * 0.1

    # Main path (single-tile fast path).
    out = jax.block_until_ready(channel_attention(x, w1, w2))
    ref = channel_attention_ref(x, w1, w2)
    assert out.shape == (B, C, 1, 1), out.shape
    assert jnp.allclose(out, ref, atol=1e-5, rtol=1e-5), (
        float(jnp.max(jnp.abs(out - ref))))

    # Also exercise the multi-tile path with a masked partial last tile
    # (HW = 18*18 = 324 -> tiles of 128, last tile masked) by forcing a tiny
    # per-tile byte budget.
    x2 = jax.random.normal(kx, (B, C, 18, 18), dtype=jnp.float32)
    out2 = jax.block_until_ready(channel_attention(x2, w1, w2, tile_bytes=32 * 1024))
    ref2 = channel_attention_ref(x2, w1, w2)
    assert jnp.allclose(out2, ref2, atol=1e-5, rtol=1e-5), (
        float(jnp.max(jnp.abs(out2 - ref2))))

    print("KERNEL_OK")
</pallas_src>

<mosaic_0001>
module attributes {stable_mosaic.version = 11 : i64} {
  func.func @_channel_attention_kernel(%arg0: i32, %arg1: i32, %arg2: memref<1x64x256xf32, #tpu.memory_space<vmem>>, %arg3: memref<4x64xf32, #tpu.memory_space<vmem>>, %arg4: memref<64x4xf32, #tpu.memory_space<vmem>>, %arg5: memref<1x64x1xf32, #tpu.memory_space<vmem>>, %arg6: memref<64x1xf32, #tpu.memory_space<vmem>>, %arg7: memref<64x1xf32, #tpu.memory_space<vmem>>) attributes {dimension_semantics = [#tpu.dimension_semantics<parallel>, #tpu.dimension_semantics<arbitrary>], iteration_bounds = array<i64: 2, 1>, scalar_prefetch = 0 : i64, scratch_operands = 2 : i64, tpu.core_type = #tpu.core_type<tc>, window_params = [{transform_indices = @transform_0, window_bounds = array<i64: 1, 64, 256>}, {pipeline_mode = #tpu.pipeline_mode<synchronous>, transform_indices = @transform_1, window_bounds = array<i64: 4, 64>}, {pipeline_mode = #tpu.pipeline_mode<synchronous>, transform_indices = @transform_2, window_bounds = array<i64: 64, 4>}, {transform_indices = @transform_3, window_bounds = array<i64: 1, 64, 1>}]} {
    %c0_i32 = arith.constant 0 : i32
    %0 = arith.cmpi eq, %arg1, %c0_i32 : i32
    %1 = arith.extui %0 : i1 to i32
    %c0_i32_0 = arith.constant 0 : i32
    %2 = arith.cmpi ne, %1, %c0_i32_0 : i32
    scf.if %2 {
      %cst_14 = arith.constant 0.000000e+00 : f32
      %18 = vector.broadcast %cst_14 : f32 to vector<64x1xf32>
      %c0_15 = arith.constant 0 : index
      %c0_16 = arith.constant 0 : index
      %19 = vector.load %arg6[%c0_15, %c0_16] : memref<64x1xf32, #tpu.memory_space<vmem>>, vector<64x1xf32>
      tpu.vector_store %arg6[%c0_15, %c0_16], %18 {strides = array<i32>} : memref<64x1xf32, #tpu.memory_space<vmem>>, vector<64x1xf32>,
      %cst_17 = arith.constant 0xFF800000 : f32
      %20 = vector.broadcast %cst_17 : f32 to vector<64x1xf32>
      %c0_18 = arith.constant 0 : index
      %c0_19 = arith.constant 0 : index
      %21 = vector.load %arg7[%c0_18, %c0_19] : memref<64x1xf32, #tpu.memory_space<vmem>>, vector<64x1xf32>
      tpu.vector_store %arg7[%c0_18, %c0_19], %20 {strides = array<i32>} : memref<64x1xf32, #tpu.memory_space<vmem>>, vector<64x1xf32>,
    } else {
    }
    %c0 = arith.constant 0 : index
    %c0_1 = arith.constant 0 : index
    %c0_2 = arith.constant 0 : index
    %3 = vector.load %arg2[%c0, %c0_1, %c0_2] : memref<1x64x256xf32, #tpu.memory_space<vmem>>, vector<1x64x256xf32>
    %4 = vector.shape_cast %3 : vector<1x64x256xf32> to vector<64x256xf32>
    %c0_3 = arith.constant 0 : index
    %c0_4 = arith.constant 0 : index
    %5 = vector.load %arg6[%c0_3, %c0_4] : memref<64x1xf32, #tpu.memory_space<vmem>>, vector<64x1xf32>
    %cst = arith.constant dense<0.000000e+00> : vector<64xf32>
    %6 = vector.multi_reduction <add>, %4, %cst [1] : vector<64x256xf32> to vector<64xf32>
    %7 = vector.shape_cast %6 : vector<64xf32> to vector<64x1xf32>
    %8 = arith.addf %5, %7 : vector<64x1xf32>
    %c0_5 = arith.constant 0 : index
    %c0_6 = arith.constant 0 : index
    %9 = vector.load %arg6[%c0_5, %c0_6] : memref<64x1xf32, #tpu.memory_space<vmem>>, vector<64x1xf32>
    tpu.vector_store %arg6[%c0_5, %c0_6], %8 {strides = array<i32>} : memref<64x1xf32, #tpu.memory_space<vmem>>, vector<64x1xf32>,
    %c0_7 = arith.constant 0 : index
    %c0_8 = arith.constant 0 : index
    %10 = vector.load %arg7[%c0_7, %c0_8] : memref<64x1xf32, #tpu.memory_space<vmem>>, vector<64x1xf32>
    %cst_9 = arith.constant dense<0xFF800000> : vector<64xf32>
    %11 = vector.multi_reduction <maximumf>, %4, %cst_9 [1] : vector<64x256xf32> to vector<64xf32>
    %12 = vector.shape_cast %11 : vector<64xf32> to vector<64x1xf32>
    %13 = arith.maximumf %10, %12 : vector<64x1xf32>
    %c0_10 = arith.constant 0 : index
    %c0_11 = arith.constant 0 : index
    %14 = vector.load %arg7[%c0_10, %c0_11] : memref<64x1xf32, #tpu.memory_space<vmem>>, vector<64x1xf32>
    tpu.vector_store %arg7[%c0_10, %c0_11], %13 {strides = array<i32>} : memref<64x1xf32, #tpu.memory_space<vmem>>, vector<64x1xf32>,
    %c0_i32_12 = arith.constant 0 : i32
    %15 = arith.cmpi eq, %arg1, %c0_i32_12 : i32
    %16 = arith.extui %15 : i1 to i32
    %c0_i32_13 = arith.constant 0 : i32
    %17 = arith.cmpi ne, %16, %c0_i32_13 : i32
    scf.if %17 {
      %c0_14 = arith.constant 0 : index
      %c0_15 = arith.constant 0 : index
      %18 = vector.load %arg6[%c0_14, %c0_15] : memref<64x1xf32, #tpu.memory_space<vmem>>, vector<64x1xf32>
      %cst_16 = arith.constant 3.906250e-03 : f32
      %19 = vector.broadcast %cst_16 : f32 to vector<64x1xf32>
      %20 = arith.mulf %18, %19 : vector<64x1xf32>
      %c0_17 = arith.constant 0 : index
      %c0_18 = arith.constant 0 : index
      %21 = vector.load %arg7[%c0_17, %c0_18] : memref<64x1xf32, #tpu.memory_space<vmem>>, vector<64x1xf32>
      %c0_19 = arith.constant 0 : index
      %c0_20 = arith.constant 0 : index
      %22 = vector.load %arg3[%c0_19, %c0_20] : memref<4x64xf32, #tpu.memory_space<vmem>>, vector<4x64xf32>
      %c0_21 = arith.constant 0 : index
      %c0_22 = arith.constant 0 : index
      %23 = vector.load %arg4[%c0_21, %c0_22] : memref<64x4xf32, #tpu.memory_space<vmem>>, vector<64x4xf32>
      %cst_23 = arith.constant dense<0.000000e+00> : vector<4x1xf32>
      %24 = tpu.matmul %22, %20, %cst_23 {dimension_numbers = #tpu.dot_dimension_numbers<[1], [0], [0], [1], [0, 0, 1, 1], [], []>} : vector<4x64xf32>, vector<64x1xf32>, vector<4x1xf32> -> vector<4x1xf32>
      %cst_24 = arith.constant 0.000000e+00 : f32
      %25 = vector.broadcast %cst_24 : f32 to vector<4x1xf32>
      %26 = arith.maximumf %24, %25 : vector<4x1xf32>
      %cst_25 = arith.constant dense<0.000000e+00> : vector<4x1xf32>
      %27 = tpu.matmul %22, %21, %cst_25 {dimension_numbers = #tpu.dot_dimension_numbers<[1], [0], [0], [1], [0, 0, 1, 1], [], []>} : vector<4x64xf32>, vector<64x1xf32>, vector<4x1xf32> -> vector<4x1xf32>
      %cst_26 = arith.constant 0.000000e+00 : f32
      %28 = vector.broadcast %cst_26 : f32 to vector<4x1xf32>
      %29 = arith.maximumf %27, %28 : vector<4x1xf32>
      %cst_27 = arith.constant dense<0.000000e+00> : vector<64x1xf32>
      %30 = tpu.matmul %23, %26, %cst_27 {dimension_numbers = #tpu.dot_dimension_numbers<[1], [0], [0], [1], [0, 0, 1, 1], [], []>} : vector<64x4xf32>, vector<4x1xf32>, vector<64x1xf32> -> vector<64x1xf32>
      %cst_28 = arith.constant dense<0.000000e+00> : vector<64x1xf32>
      %31 = tpu.matmul %23, %29, %cst_28 {dimension_numbers = #tpu.dot_dimension_numbers<[1], [0], [0], [1], [0, 0, 1, 1], [], []>} : vector<64x4xf32>, vector<4x1xf32>, vector<64x1xf32> -> vector<64x1xf32>
      %32 = arith.addf %30, %31 : vector<64x1xf32>
      %33 = arith.negf %32 : vector<64x1xf32>
      %34 = math.exp %33 : vector<64x1xf32>
      %cst_29 = arith.constant 1.000000e+00 : f32
      %35 = vector.broadcast %cst_29 : f32 to vector<64x1xf32>
      %36 = arith.addf %35, %34 : vector<64x1xf32>
      %37 = arith.divf %35, %36 : vector<64x1xf32>
      %38 = vector.shape_cast %37 : vector<64x1xf32> to vector<1x64x1xf32>
      %c0_30 = arith.constant 0 : index
      %c0_31 = arith.constant 0 : index
      %c0_32 = arith.constant 0 : index
      %39 = vector.load %arg5[%c0_30, %c0_31, %c0_32] : memref<1x64x1xf32, #tpu.memory_space<vmem>>, vector<1x64x1xf32>
      tpu.vector_store %arg5[%c0_30, %c0_31, %c0_32], %38 {strides = array<i32>} : memref<1x64x1xf32, #tpu.memory_space<vmem>>, vector<1x64x1xf32>,
    } else {
    }
    return
  }
  func.func @transform_0(%arg0: i32, %arg1: i32) -> (i32, i32, i32) {
    %c0_i32 = arith.constant 0 : i32
    %c0_i32_0 = arith.constant 0 : i32
    return %arg0, %c0_i32, %arg1 : i32, i32, i32
  }
  func.func @transform_1(%arg0: i32, %arg1: i32) -> (i32, i32) {
    %c0_i32 = arith.constant 0 : i32
    %c0_i32_0 = arith.constant 0 : i32
    %c0_i32_1 = arith.constant 0 : i32
    return %c0_i32, %c0_i32_0 : i32, i32
  }
  func.func @transform_2(%arg0: i32, %arg1: i32) -> (i32, i32) {
    %c0_i32 = arith.constant 0 : i32
    %c0_i32_0 = arith.constant 0 : i32
    %c0_i32_1 = arith.constant 0 : i32
    return %c0_i32, %c0_i32_0 : i32, i32
  }
  func.func @transform_3(%arg0: i32, %arg1: i32) -> (i32, i32, i32) {
    %c0_i32 = arith.constant 0 : i32
    %c0_i32_0 = arith.constant 0 : i32
    %c0_i32_1 = arith.constant 0 : i32
    return %arg0, %c0_i32, %c0_i32_0 : i32, i32, i32
  }
}

</mosaic_0001>

<bundles_post_ra>
// kernel: tpu_custom_call.1
= control target key start
LH: loop header
LB: loop body
LE: loop exit
PB: predicated region body
PF: predicated region fallthrough
CT: control target
= control target key end

     0   :  { %8 = vsyncpa [#allocation5], 0  ;;  %s1466_s0 = inlined_call_operand.hbm [shape: f32[2,64,256], index: 0, kind: input, shape index: {}]   ;;  %s1467_s1 = inlined_call_operand.vmem [shape: f32[4,64], index: 1, kind: input, shape index: {}]   ;;  %s1468_s2 = inlined_call_operand.vmem [shape: f32[64,4], index: 2, kind: input, shape index: {}]   ;;  %s1469_s3 = inlined_call_operand.vmem [shape: f32[2,64,1], index: 3, kind: output, shape index: {}]  }
   0x1   :  { %10 = vsyncpa [#allocation5 + $0x1], 0  ;;  %s1243_s12 = smov 0   ;;  %s1245_s13 = smov 0  }
   0x2   :  { %s1247_s14 = smov 0   ;;  %s1249_s15 = smov 0  }
   0x3   :  { %s1251_s16 = smov 0   ;;  %s1253_s17 = smov 0  }
   0x4 LB: > { %s900_s18 = sadd.s32 4294967295, %s1215_s17   ;;  %s28_s19 = sadd.s32 1, %s1211_s16  ;;  %s1215_s17 = sphi %s1253_s17, %s16_s17   ;;  %s1211_s16 = sphi %s1251_s16, %s1477_s16   ;;  %s1207_s15 = sphi %s1249_s15, %s1476_s15   ;;  %s1203_s14 = sphi %s1247_s14, %s1475_s14   ;;  %s1199_s13 = sphi %s1245_s13, %s1474_s13   ;;  %s1195_s12 = sphi %s1243_s12, %s1473_s12  }
   0x5   : > { %p30_p0 = scmp.ge.s32.totalorder %s28_s19, 2  ;;  %s37_s20 = sadd.s32 1, %s1203_s14 }
   0x6   : > { %p44_p1 = scmp.ne.s32.totalorder %s1203_s14, %s1199_s13  ;;  %p45_p2 = scmp.eq.s32.totalorder %s1215_s17, 0 }
   0x7   : > { %s1479_s19 = smov (%p30_p0, %s28_s19), 0  ;;  %p50_p4 = scmp.ne.s32.totalorder %s1199_s13, %s1195_s12 }
   0x8   : > { %p1279_p3 = por %p45_p2, %p44_p1  ;;  %s32_s22 = ssub.s32 %s1211_s16, %s1479_s19 }
   0x9   : > { %p51_p5 = scmp.eq.s32.totalorder %s900_s18, 0  ;;  %p35_p6 = scmp.eq.s32.totalorder %s32_s22, 0 }
   0xa   : > { %p1051_p8 = scmp.lt.s32.totalorder %s1215_s17, 2  ;;  %s148_s25 = sand.u32 1, %s1203_s14  }
   0xb   : > { %p1286_p7 = por %p51_p5, %p50_p4  ;;  %s941_s26 = sshll.u32 %s1211_s16, 11 }
   0xc   : > { %s1292_s24 = scalar_select %p35_p6, %s1203_s14, %s37_s20  }
   0xd   : > { %s904_s27 = sshll.u32 %s148_s25, 7  ;;  %s160_s30 = scalar_lea.hbm %s1466_s0, %s941_s26 }
   0xe   : > { %s152_s4 = scalar_lea.vmem [#allocation4], %s904_s27  ;;  %p1301_p9 = pnand %p1051_p8, %p1279_p3 }
   0xf   : > { %s161_s5 = sshll.u32 %s152_s4, 4  ;;  %s149_s7 = scalar_lea.sflag [#allocation5], %s148_s25  ;;  %s162_s5 = int_to_ptr.vmem [resolvable:$true] %s161_s5 }
  0x10   : > { %p1139_p10 = pneg %p1301_p9  ;;  %s1150_s8 = scalar_lea.vmem %s162_s5, 2048 }
  0x11   : > { %p1151_p11 = scmp.ne.s32.totalorder %s162_s5, %s1150_s8  ;;  %s1217_s9 = smov [#allocation4]  }
  0x12   : > { %s1155_s10 = sshll.u32 %s1217_s9, 4  ;;  %s1156_s10 = int_to_ptr.vmem [resolvable:$false] %s1155_s10 }
  0x13   : > { %p1153_p12 = pnand %p1151_p11, %p1139_p10  ;;  %s1157_s11 = scalar_lea.vmem %s1156_s10, 4096 }
  0x14   : > { %p1158_p0 = scmp.lt.s32.totalorder %s162_s5, %s1156_s10  ;;  %p1159_p1 = scmp.lt.s32.totalorder %s1157_s11, %s1150_s8 }
  0x15   : > { %p1154_p13 = pneg %p1153_p12 }
  0x16   : > { %p1160_p2 = por %p1159_p1, %p1158_p0 }
  0x18   : > { %p1161_p3 = pnand %p1160_p2, %p1154_p13 }
  0x1a   : > { %1164 = shalt.err (!%p1161_p3)
}
  0x1b   : > { %s1218_s12 = smov 256   ;;  %s1219_s18 = smov 16  }
  0x1c   : > { %1050 = dma.hbm_to_vmem [thread:$0]  (!%p1301_p9), %s160_s30, 2048, %s162_s5, %s149_s7, %s1218_s12, %s1218_s12, %s1219_s18  }
  0x1d   : > { %p907_p4 = scmp.ge.s32.totalorder %s1215_s17, 1  ;;  %p169_p5 = scmp.lt.s32.totalorder %s1215_s17, 3 }
  0x1f   : > { %p170_p6 = pnand %p907_p4, %p169_p5 }
  0x20   : > { %s175_s20 = sand.u32 (!%p170_p6), 1, %s1199_s13  }
  0x21   : > { %173 = sbr.rel (%p170_p6) target bundleno = 660 (0x294), region = 32  ;;  %s908_s21 = sshll.u32 (!%p170_p6), %s175_s20, 7 }
  0x22   : > { %s176_s22 = scalar_lea.sflag (!%p170_p6), [#allocation5], %s175_s20  ;;  %s1312_s25 = scalar_lea.vmem (!%p170_p6), [#allocation4], %s908_s21 }
  0x26   : > { %1190 = dma.done.wait (%p1286_p7), %s176_s22, 2048  }
  0x27   : > { %1192 = vsyncadd (%p1286_p7), %s176_s22, 4294965248  ;;  %vm212_vm0 = vcmask 7168   ;;  %v1220_v0 = vmov 0.0   ;;  %v243_v1 = vld [vmem:[%s1312_s25 + $0x70] sm:$0xff]  ;;  %v244_v2 = vld [vmem:[%s1312_s25 + $0x78] sm:$0xff]  ;;  %v1221_v15 = vmov -inf  }
  0x28   : > { %220 = vst.msk [vmem:[#allocation2 + $0x38] sm:$0xff] %vm212_vm0, %v1220_v0  ;;  %213 = vst.msk [vmem:[#allocation2] sm:$0xff] %vm212_vm0, %v1220_v0  ;;  %979 = vmatprep.subr.mxu0 %v1220_v0  ;;  %998 = vmatprep.subr.mxu1 %v1220_v0  ;;  %v241_v3 = vld [vmem:[%s1312_s25 + $0x60] sm:$0xff]  ;;  %v274_v4 = vadd.f32 %v244_v2, %v243_v1  ;;  %v323_v5 = vmax.f32 %v243_v1, %v244_v2  ;;  %v242_v6 = vld [vmem:[%s1312_s25 + $0x68] sm:$0xff]  ;;  %vm1222_vm1 = vmmov 0   ;;  %vm378_vm2 = vcmask 523264  }
  0x29   : > { %214 = vst.msk [vmem:[#allocation2 + $0x8] sm:$0xff] %vm212_vm0, %v1220_v0  ;;  %215 = vst.msk [vmem:[#allocation2 + $0x10] sm:$0xff] %vm212_vm0, %v1220_v0  ;;  %v239_v7 = vld [vmem:[%s1312_s25 + $0x50] sm:$0xff]  ;;  %v240_v8 = vld [vmem:[%s1312_s25 + $0x58] sm:$0xff]  ;;  %v271_v9 = vadd.f32 %v242_v6, %v241_v3  ;;  %v320_v13 = vmax.f32 %v241_v3, %v242_v6  ;;  %995 = vmatprep.mubr.msk.f32.mxu0 %vm1222_vm1, %v1220_v0  ;;  %1014 = vmatprep.mubr.msk.f32.mxu1 %vm1222_vm1, %v1220_v0  ;;  %vm524_vm3 = vcmask 31744   ;;  %vm549_vm4 = vcmask 1043456  }
  0x2a   : > { %216 = vst.msk [vmem:[#allocation2 + $0x18] sm:$0xff] %vm212_vm0, %v1220_v0  ;;  %217 = vst.msk [vmem:[#allocation2 + $0x20] sm:$0xff] %vm212_vm0, %v1220_v0  ;;  %275 = vadd.xlane.f32.xlu0 %v274_v4  ;;  %324 = vmax.xlane.f32.xlu1 %v323_v5  ;;  %v268_v10 = vadd.f32 %v240_v8, %v239_v7  ;;  %v237_v11 = vld [vmem:[%s1312_s25 + $0x40] sm:$0xff]  ;;  %v238_v12 = vld [vmem:[%s1312_s25 + $0x48] sm:$0xff]  ;;  %v317_v18 = vmax.f32 %v239_v7, %v240_v8  ;;  %p203_p7 = scmp.lt.s32.totalorder %s1207_s15, 1 }
  0x2b   : > { %218 = vst.msk [vmem:[#allocation2 + $0x28] sm:$0xff] %vm212_vm0, %v1220_v0  ;;  %219 = vst.msk [vmem:[#allocation2 + $0x30] sm:$0xff] %vm212_vm0, %v1220_v0  ;;  %v265_v14 = vadd.f32 %v238_v12, %v237_v11  ;;  %v235_v16 = vld [vmem:[%s1312_s25 + $0x30] sm:$0xff]  ;;  %v236_v17 = vld [vmem:[%s1312_s25 + $0x38] sm:$0xff]  ;;  %v314_v22 = vmax.f32 %v237_v11, %v238_v12 }
  0x2c   : > { %228 = vst.msk [vmem:[#allocation3 + $0x38] sm:$0xff] %vm212_vm0, %v1221_v15  ;;  %221 = vst.msk [vmem:[#allocation3] sm:$0xff] %vm212_vm0, %v1221_v15  ;;  %v262_v19 = vadd.f32 %v236_v17, %v235_v16  ;;  %v233_v20 = vld [vmem:[%s1312_s25 + $0x20] sm:$0xff]  ;;  %v234_v21 = vld [vmem:[%s1312_s25 + $0x28] sm:$0xff]  ;;  %v311_v26 = vmax.f32 %v235_v16, %v236_v17  ;;  %s1481_s15 = smov (!%p203_p7, %s1207_s15), 1 }
  0x2d   : > { %222 = vst.msk [vmem:[#allocation3 + $0x8] sm:$0xff] %vm212_vm0, %v1221_v15  ;;  %223 = vst.msk [vmem:[#allocation3 + $0x10] sm:$0xff] %vm212_vm0, %v1221_v15  ;;  %v259_v23 = vadd.f32 %v234_v21, %v233_v20  ;;  %v231_v24 = vld [vmem:[%s1312_s25 + $0x10] sm:$0xff]  ;;  %v232_v25 = vld [vmem:[%s1312_s25 + $0x18] sm:$0xff]  ;;  %v308_v30 = vmax.f32 %v233_v20, %v234_v21  ;;  %s942_s22 = sshll.u32 %s1481_s15, 6 }
  0x2e   : > { %272 = vadd.xlane.f32.xlu0 %v271_v9  ;;  %269 = vadd.xlane.f32.xlu1 %v268_v10  ;;  %224 = vst.msk [vmem:[#allocation3 + $0x18] sm:$0xff] %vm212_vm0, %v1221_v15  ;;  %225 = vst.msk [vmem:[#allocation3 + $0x20] sm:$0xff] %vm212_vm0, %v1221_v15  ;;  %v256_v27 = vadd.f32 %v232_v25, %v231_v24  ;;  %v229_v28 = vld [vmem:[%s1312_s25] sm:$0xff]  ;;  %v230_v29 = vld [vmem:[%s1312_s25 + $0x8] sm:$0xff]  ;;  %v305_v32 = vmax.f32 %v231_v24, %v232_v25  ;;  %s207_s26 = scalar_lea.vmem %s1469_s3, %s942_s22 }
  0x2f   : > { %226 = vst.msk [vmem:[#allocation3 + $0x28] sm:$0xff] %vm212_vm0, %v1221_v15  ;;  %227 = vst.msk [vmem:[#allocation3 + $0x30] sm:$0xff] %vm212_vm0, %v1221_v15  ;;  %v253_v31 = vadd.f32 %v230_v29, %v229_v28  ;;  %v302_v33 = vmax.f32 %v229_v28, %v230_v29  ;;  %v252_v34 = vld [vmem:[#allocation2 + $0x38] sm:$0xff] }
  0x30   : > { %v247_v63 = vld [vmem:[#allocation2 + $0x10] sm:$0xff]  ;;  %v246_v10 = vld [vmem:[#allocation2 + $0x8] sm:$0xff] }
  0x31   : > { %v249_v47 = vld [vmem:[#allocation2 + $0x20] sm:$0xff]  ;;  %v248_v55 = vld [vmem:[#allocation2 + $0x18] sm:$0xff] }
  0x32   : > { %321 = vmax.xlane.f32.xlu0 %v320_v13  ;;  %266 = vadd.xlane.f32.xlu1 %v265_v14  ;;  %v251_v40 = vld [vmem:[#allocation2 + $0x30] sm:$0xff]  ;;  %v250_v41 = vld [vmem:[#allocation2 + $0x28] sm:$0xff] }
  0x33   : > { %v301_v35 = vld [vmem:[#allocation3 + $0x38] sm:$0xff]  ;;  %v294_v28 = vld [vmem:[#allocation3] sm:$0xff] }
  0x34   : > { %v296_v17 = vld [vmem:[#allocation3 + $0x10] sm:$0xff] }
  0x35   : > { %v298_v61 = vld [vmem:[#allocation3 + $0x20] sm:$0xff]  ;;  %v297_v8 = vld [vmem:[#allocation3 + $0x18] sm:$0xff] }
  0x36   : > { %318 = vmax.xlane.f32.xlu0 %v317_v18  ;;  %263 = vadd.xlane.f32.xlu1 %v262_v19  ;;  %v300_v46 = vld [vmem:[#allocation3 + $0x30] sm:$0xff]  ;;  %v299_v52 = vld [vmem:[#allocation3 + $0x28] sm:$0xff]  ;;  %v245_v19 = vld [vmem:[#allocation2] sm:$0xff] }
  0x3a   : > { %315 = vmax.xlane.f32.xlu0 %v314_v22  ;;  %260 = vadd.xlane.f32.xlu1 %v259_v23 }
  0x3e   : > { %312 = vmax.xlane.f32.xlu0 %v311_v26  ;;  %257 = vadd.xlane.f32.xlu1 %v256_v27  ;;  %v295_v26 = vld [vmem:[#allocation3 + $0x8] sm:$0xff] }
  0x42   : > { %309 = vmax.xlane.f32.xlu0 %v308_v30  ;;  %254 = vadd.xlane.f32.xlu1 %v253_v31 }
  0x46   : > { %306 = vmax.xlane.f32.xlu0 %v305_v32  ;;  %303 = vmax.xlane.f32.xlu1 %v302_v33 }
  0xb3   : > { %v276_v36 = vpop.xlane.xlu0 %275  ;;  %v325_v37 = vpop.xlane.xlu1 %324 }
  0xb4   : > { %v284_v38 = vadd.f32 %v276_v36, %v252_v34  ;;  %v333_v39 = vmax.f32 %v301_v35, %v325_v37 }
  0xb6   : > { %293 = vst.msk [vmem:[#allocation2 + $0x38] sm:$0xff] %vm212_vm0, %v284_v38  ;;  %341 = vst.msk [vmem:[#allocation3 + $0x38] sm:$0xff] %vm212_vm0, %v333_v39 }
  0xb7   : > { %v273_v42 = vpop.xlane.xlu0 %272  ;;  %v270_v43 = vpop.xlane.xlu1 %269 }
  0xb8   : > { %v283_v44 = vadd.f32 %v273_v42, %v251_v40  ;;  %v282_v45 = vadd.f32 %v270_v43, %v250_v41  ;;  %v369_v41 = vld [vmem:[%s1467_s1] sm:$0xf] }
  0xba   : > { %292 = vst.msk [vmem:[#allocation2 + $0x30] sm:$0xff] %vm212_vm0, %v283_v44  ;;  %291 = vst.msk [vmem:[#allocation2 + $0x28] sm:$0xff] %vm212_vm0, %v282_v45  ;;  %v370_v44 = vld [vmem:[%s1468_s2] sm:$0xff] }
  0xbb   : > { %v322_v48 = vpop.xlane.xlu0 %321  ;;  %v267_v49 = vpop.xlane.xlu1 %266 }
  0xbc   : > { %v332_v50 = vmax.f32 %v300_v46, %v322_v48  ;;  %v281_v51 = vadd.f32 %v267_v49, %v249_v47  ;;  %v371_v48 = vld [vmem:[%s1468_s2 + $0x8] sm:$0xff] }
  0xbd   : > { %v352_v53 = vld [vmem:[#allocation2 + $0x38] sm:$0xff] }
  0xbe   : > { %v368_v54 = vld [vmem:[#allocation3 + $0x38] sm:$0xff]  ;;  %340 = vst.msk [vmem:[#allocation3 + $0x30] sm:$0xff] %vm212_vm0, %v332_v50  ;;  %290 = vst.msk [vmem:[#allocation2 + $0x20] sm:$0xff] %vm212_vm0, %v281_v51  ;;  %v360_v56 = vmul.f32 0.00390625, %v352_v53  ;;  %v374_v53 = vld [vmem:[%s1468_s2 + $0x20] sm:$0xff] }
  0xbf   : > { %999 = vmatpush3.msra.mxu1 %v368_v54  ;;  %v319_v57 = vpop.xlane.xlu0 %318  ;;  %v264_v58 = vpop.xlane.xlu1 %263  ;;  %v375_v54 = vld [vmem:[%s1468_s2 + $0x28] sm:$0xff] }
  0xc0   : > { %1000 = vmatprep.subr.mxu1 %v1220_v0  ;;  %v331_v59 = vmax.f32 %v299_v52, %v319_v57  ;;  %980 = vmatpush3.msra.mxu0 %v360_v56  ;;  %v280_v60 = vadd.f32 %v264_v58, %v248_v55  ;;  %v373_v52 = vld [vmem:[%s1468_s2 + $0x18] sm:$0xff]  ;;  %v376_v55 = vld [vmem:[%s1468_s2 + $0x30] sm:$0xff] }
  0xc1   : > { %981 = vmatprep.subr.mxu0 %v1220_v0  ;;  %v351_v62 = vld [vmem:[#allocation2 + $0x30] sm:$0xff]  ;;  %v350_v1 = vld [vmem:[#allocation2 + $0x28] sm:$0xff]  ;;  %v377_v56 = vld [vmem:[%s1468_s2 + $0x38] sm:$0xff] }
  0xc2   : > { %339 = vst.msk [vmem:[#allocation3 + $0x28] sm:$0xff] %vm212_vm0, %v331_v59  ;;  %289 = vst.msk [vmem:[#allocation2 + $0x18] sm:$0xff] %vm212_vm0, %v280_v60  ;;  %v359_v2 = vmul.f32 0.00390625, %v351_v62  ;;  %v358_v3 = vmul.f32 0.00390625, %v350_v1 }
  0xc3   : > { %v316_v4 = vpop.xlane.xlu0 %315  ;;  %v261_v5 = vpop.xlane.xlu1 %260 }
  0xc4   : > { %v330_v6 = vmax.f32 %v298_v61, %v316_v4  ;;  %982 = vmatpush3.msra.mxu0 %v359_v2  ;;  %v279_v7 = vadd.f32 %v261_v5, %v247_v63 }
  0xc5   : > { %983 = vmatprep.subr.mxu0 %v1220_v0  ;;  %v367_v9 = vld [vmem:[#allocation3 + $0x30] sm:$0xff]  ;;  %v349_v11 = vld [vmem:[#allocation2 + $0x20] sm:$0xff] }
  0xc6   : > { %338 = vst.msk [vmem:[#allocation3 + $0x20] sm:$0xff] %vm212_vm0, %v330_v6  ;;  %288 = vst.msk [vmem:[#allocation2 + $0x10] sm:$0xff] %vm212_vm0, %v279_v7  ;;  %984 = vmatpush3.msra.mxu0 %v358_v3  ;;  %1001 = vmatpush3.msra.mxu1 %v367_v9  ;;  %v357_v12 = vmul.f32 0.00390625, %v349_v11 }
  0xc7   : > { %v313_v13 = vpop.xlane.xlu0 %312  ;;  %v258_v14 = vpop.xlane.xlu1 %257  ;;  %985 = vmatprep.subr.mxu0 %v1220_v0  ;;  %1002 = vmatprep.subr.mxu1 %v1220_v0 }
  0xc8   : > { %v329_v15 = vmax.f32 %v297_v8, %v313_v13  ;;  %v278_v16 = vadd.f32 %v258_v14, %v246_v10  ;;  %986 = vmatpush3.msra.mxu0 %v357_v12 }
  0xc9   : > { %v366_v18 = vld [vmem:[#allocation3 + $0x28] sm:$0xff]  ;;  %987 = vmatprep.subr.mxu0 %v1220_v0  ;;  %v348_v20 = vld [vmem:[#allocation2 + $0x18] sm:$0xff] }
  0xca   : > { %337 = vst.msk [vmem:[#allocation3 + $0x18] sm:$0xff] %vm212_vm0, %v329_v15  ;;  %287 = vst.msk [vmem:[#allocation2 + $0x8] sm:$0xff] %vm212_vm0, %v278_v16  ;;  %1003 = vmatpush3.msra.mxu1 %v366_v18  ;;  %v356_v21 = vmul.f32 0.00390625, %v348_v20 }
  0xcb   : > { %v310_v22 = vpop.xlane.xlu0 %309  ;;  %v255_v23 = vpop.xlane.xlu1 %254  ;;  %1004 = vmatprep.subr.mxu1 %v1220_v0 }
  0xcc   : > { %v328_v24 = vmax.f32 %v296_v17, %v310_v22  ;;  %v277_v25 = vadd.f32 %v255_v23, %v245_v19  ;;  %988 = vmatpush3.msra.mxu0 %v356_v21 }
  0xcd   : > { %v365_v27 = vld [vmem:[#allocation3 + $0x20] sm:$0xff]  ;;  %989 = vmatprep.subr.mxu0 %v1220_v0  ;;  %v347_v29 = vld [vmem:[#allocation2 + $0x10] sm:$0xff] }
  0xce   : > { %336 = vst.msk [vmem:[#allocation3 + $0x10] sm:$0xff] %vm212_vm0, %v328_v24  ;;  %286 = vst.msk [vmem:[#allocation2] sm:$0xff] %vm212_vm0, %v277_v25  ;;  %1005 = vmatpush3.msra.mxu1 %v365_v27  ;;  %v355_v30 = vmul.f32 0.00390625, %v347_v29 }
  0xcf   : > { %v307_v31 = vpop.xlane.xlu0 %306  ;;  %v304_v32 = vpop.xlane.xlu1 %303  ;;  %1006 = vmatprep.subr.mxu1 %v1220_v0 }
  0xd0   : > { %v327_v33 = vmax.f32 %v295_v26, %v307_v31  ;;  %v326_v34 = vmax.f32 %v294_v28, %v304_v32  ;;  %990 = vmatpush3.msra.mxu0 %v355_v30 }
  0xd1   : > { %v364_v35 = vld [vmem:[#allocation3 + $0x18] sm:$0xff]  ;;  %991 = vmatprep.subr.mxu0 %v1220_v0  ;;  %v346_v36 = vld [vmem:[#allocation2 + $0x8] sm:$0xff] }
  0xd2   : > { %335 = vst.msk [vmem:[#allocation3 + $0x8] sm:$0xff] %vm212_vm0, %v327_v33  ;;  %334 = vst.msk [vmem:[#allocation3] sm:$0xff] %vm212_vm0, %v326_v34  ;;  %1007 = vmatpush3.msra.mxu1 %v364_v35  ;;  %v354_v37 = vmul.f32 0.00390625, %v346_v36 }
  0xd3   : > { %1008 = vmatprep.subr.mxu1 %v1220_v0 }
  0xd4   : > { %992 = vmatpush3.msra.mxu0 %v354_v37 }
  0xd5   : > { %v363_v38 = vld [vmem:[#allocation3 + $0x10] sm:$0xff]  ;;  %993 = vmatprep.subr.mxu0 %v1220_v0  ;;  %v345_v39 = vld [vmem:[#allocation2] sm:$0xff] }
  0xd6   : > { %1009 = vmatpush3.msra.mxu1 %v363_v38  ;;  %v353_v40 = vmul.f32 0.00390625, %v345_v39 }
  0xd7   : > { %1010 = vmatprep.subr.mxu1 %v1220_v0 }
  0xd8   : > { %994 = vmatpush3.msra.mxu0 %v353_v40 }
  0xd9   : > { %v362_v42 = vld [vmem:[#allocation3 + $0x8] sm:$0xff]  ;;  %996 = vmatmul.mubr.msk.f32.vlgmr.msra.gmra.mxu0 %vm378_vm2, %v369_v41  ;;  %v361_v43 = vld [vmem:[#allocation3] sm:$0xff] }
  0xda   : > { %1011 = vmatpush3.msra.mxu1 %v362_v42  ;;  %1019 = vmatprep.mubr.msk.f32.mxu0 %vm524_vm3, %v370_v44 }
  0xdb   : > { %1012 = vmatprep.subr.mxu1 %v1220_v0  ;;  %v372_v0 = vld [vmem:[%s1468_s2 + $0x10] sm:$0xff] }
  0xdc   : > { %1013 = vmatpush3.msra.mxu1 %v361_v43 }
  0xdd   : > { %1015 = vmatmul.mubr.msk.f32.vlgmr.msra.gmra.mxu1 %vm378_vm2, %v369_v41 }
  0xde   : > { %1033 = vmatprep.mubr.msk.f32.mxu1 %vm524_vm3, %v370_v44 }
 0x199   : > { %v448_v45 = vpop.f32.mrf.mxu0 }
 0x19a   : > { %v452_v46 = vmax.f32 %v448_v45, 0.0 }
 0x19b   : > { %v997_v47 = vpop.f32.mrf.mxu0 }
 0x19c   : > { %1031 = vmatprep.subr.msk.mxu1 %vm549_vm4, %v452_v46 }
 0x19d   : > { %v519_v49 = vpop.f32.mrf.mxu1  ;;  %1032 = vmatpush3.msk.msra.mxu1 %vm549_vm4, %v452_v46 }
 0x19e   : > { %v523_v50 = vmax.f32 %v519_v49, 0.0  ;;  %1034 = vmatmul.mubr.msk.f32.vlgmr.msra.gmra.mxu1 %vm524_vm3, %v371_v48 }
 0x19f   : > { %v1016_v51 = vpop.f32.mrf.mxu1  ;;  %1036 = vmatprep.mubr.msk.f32.mxu1 %vm524_vm3, %v372_v0 }
 0x1a0   : > { %1017 = vmatprep.subr.msk.mxu0 %vm549_vm4, %v523_v50 }
 0x1a1   : > { %1018 = vmatpush3.msk.msra.mxu0 %vm549_vm4, %v523_v50 }
 0x1a2   : > { %1020 = vmatmul.mubr.msk.f32.vlgmr.msra.gmra.mxu0 %vm524_vm3, %v371_v48  ;;  %1037 = vmatmul.mubr.msk.f32.gmra.mxu1 %vm524_vm3, %v373_v52 }
 0x1a3   : > { %1022 = vmatprep.mubr.msk.f32.mxu0 %vm524_vm3, %v372_v0  ;;  %1039 = vmatprep.mubr.msk.f32.mxu1 %vm524_vm3, %v374_v53 }
 0x1a6   : > { %1023 = vmatmul.mubr.msk.f32.gmra.mxu0 %vm524_vm3, %v373_v52  ;;  %1040 = vmatmul.mubr.msk.f32.gmra.mxu1 %vm524_vm3, %v375_v54 }
 0x1a7   : > { %1025 = vmatprep.mubr.msk.f32.mxu0 %vm524_vm3, %v374_v53  ;;  %1042 = vmatprep.mubr.msk.f32.mxu1 %vm524_vm3, %v376_v55 }
 0x1aa   : > { %1026 = vmatmul.mubr.msk.f32.gmra.mxu0 %vm524_vm3, %v375_v54  ;;  %1043 = vmatmul.mubr.msk.f32.gmra.mxu1 %vm524_vm3, %v377_v56 }
 0x1ab   : > { %1028 = vmatprep.mubr.msk.f32.mxu0 %vm524_vm3, %v376_v55 }
 0x1ae   : > { %1029 = vmatmul.mubr.msk.f32.gmra.mxu0 %vm524_vm3, %v377_v56 }
 0x25e   : > { %v1035_v57 = vpop.f32.mrf.mxu1 }
 0x260   : > { %v727_v58 = vpop.f32.mrf.mxu1 }
 0x262   : > { %v1021_v59 = vpop.f32.mrf.mxu0  ;;  %v1038_v60 = vpop.f32.mrf.mxu1 }
 0x263   : > { %v733_v61 = vadd.f32 %v1035_v57, %v1021_v59 }
 0x264   : > { %v619_v62 = vpop.f32.mrf.mxu0  ;;  %v737_v63 = vpop.f32.mrf.mxu1 }
 0x265   : > { %v932_v1 = vmul.f32 -1.442695, %v733_v61  ;;  %v728_v2 = vadd.f32 %v727_v58, %v619_v62 }
 0x266   : > { %v1024_v3 = vpop.f32.mrf.mxu0  ;;  %v1041_v4 = vpop.f32.mrf.mxu1 }
 0x267   : > { %1105 = vpow2.f32 %v932_v1  ;;  %v931_v5 = vmul.f32 -1.442695, %v728_v2  ;;  %v743_v6 = vadd.f32 %v1038_v60, %v1024_v3 }
 0x268   : > { %v629_v7 = vpop.f32.mrf.mxu0  ;;  %v747_v8 = vpop.f32.mrf.mxu1 }
 0x269   : > { %1107 = vpow2.f32 %v931_v5  ;;  %v934_v9 = vmul.f32 -1.442695, %v743_v6  ;;  %v738_v10 = vadd.f32 %v737_v63, %v629_v7 }
 0x26a   : > { %v1027_v11 = vpop.f32.mrf.mxu0  ;;  %v1044_v15 = vpop.f32.mrf.mxu1 }
 0x26b   : > { %1109 = vpow2.f32 %v934_v9  ;;  %v933_v12 = vmul.f32 -1.442695, %v738_v10  ;;  %v753_v13 = vadd.f32 %v1041_v4, %v1027_v11 }
 0x26c   : > { %v639_v14 = vpop.f32.mrf.mxu0  ;;  %v757_v22 = vpop.f32.mrf.mxu1 }
 0x26d   : > { %1111 = vpow2.f32 %v933_v12  ;;  %v936_v16 = vmul.f32 -1.442695, %v753_v13  ;;  %v748_v17 = vadd.f32 %v747_v8, %v639_v14 }
 0x26e   : > { %v1030_v18 = vpop.f32.mrf.mxu0 }
 0x26f   : > { %1113 = vpow2.f32 %v936_v16  ;;  %v935_v19 = vmul.f32 -1.442695, %v748_v17  ;;  %v763_v20 = vadd.f32 %v1044_v15, %v1030_v18 }
 0x270   : > { %v649_v21 = vpop.f32.mrf.mxu0 }
 0x271   : > { %1115 = vpow2.f32 %v935_v19  ;;  %v938_v23 = vmul.f32 -1.442695, %v763_v20  ;;  %v758_v24 = vadd.f32 %v757_v22, %v649_v21 }
 0x273   : > { %1117 = vpow2.f32 %v938_v23  ;;  %v937_v25 = vmul.f32 -1.442695, %v758_v24 }
 0x274   : > { %v1106_v26 = vpop.eup %1105 }
 0x275   : > { %v791_v27 = vadd.f32 1.0, %v1106_v26  ;;  %1119 = vpow2.f32 %v937_v25 }
 0x276   : > { %v1108_v28 = vpop.eup %1107 }
 0x277   : > { %1121 = vrcp.f32 %v791_v27  ;;  %v790_v29 = vadd.f32 1.0, %v1108_v28 }
 0x278   : > { %v1110_v30 = vpop.eup %1109 }
 0x279   : > { %1123 = vrcp.f32 %v790_v29  ;;  %v793_v31 = vadd.f32 1.0, %v1110_v30 }
 0x27a   : > { %v1112_v32 = vpop.eup %1111 }
 0x27b   : > { %1125 = vrcp.f32 %v793_v31  ;;  %v792_v33 = vadd.f32 1.0, %v1112_v32 }
 0x27c   : > { %v1114_v34 = vpop.eup %1113 }
 0x27d   : > { %1127 = vrcp.f32 %v792_v33  ;;  %v795_v35 = vadd.f32 1.0, %v1114_v34 }
 0x27e   : > { %v1116_v36 = vpop.eup %1115 }
 0x27f   : > { %1129 = vrcp.f32 %v795_v35  ;;  %v794_v37 = vadd.f32 1.0, %v1116_v36 }
 0x280   : > { %v1118_v38 = vpop.eup %1117 }
 0x281   : > { %1131 = vrcp.f32 %v794_v37  ;;  %v797_v39 = vadd.f32 1.0, %v1118_v38 }
 0x282   : > { %v1120_v40 = vpop.eup %1119 }
 0x283   : > { %1133 = vrcp.f32 %v797_v39  ;;  %v796_v41 = vadd.f32 1.0, %v1120_v40 }
 0x284   : > { %v1122_v42 = vpop.eup %1121 }
 0x285   : > { %815 = vst.msk [vmem:[%s207_s26 + $0x8] sm:$0xff] %vm212_vm0, %v1122_v42  ;;  %1135 = vrcp.f32 %v796_v41 }
 0x286   : > { %v1124_v43 = vpop.eup %1123 }
 0x287   : > { %814 = vst.msk [vmem:[%s207_s26] sm:$0xff] %vm212_vm0, %v1124_v43 }
 0x288   : > { %v1126_v44 = vpop.eup %1125 }
 0x289   : > { %817 = vst.msk [vmem:[%s207_s26 + $0x18] sm:$0xff] %vm212_vm0, %v1126_v44 }
 0x28a   : > { %v1128_v45 = vpop.eup %1127 }
 0x28b   : > { %816 = vst.msk [vmem:[%s207_s26 + $0x10] sm:$0xff] %vm212_vm0, %v1128_v45 }
 0x28c   : > { %v1130_v46 = vpop.eup %1129 }
 0x28d   : > { %819 = vst.msk [vmem:[%s207_s26 + $0x28] sm:$0xff] %vm212_vm0, %v1130_v46 }
 0x28e   : > { %v1132_v47 = vpop.eup %1131 }
 0x28f   : > { %818 = vst.msk [vmem:[%s207_s26 + $0x20] sm:$0xff] %vm212_vm0, %v1132_v47 }
 0x290   : > { %v1134_v48 = vpop.eup %1133 }
 0x291   : > { %821 = vst.msk [vmem:[%s207_s26 + $0x38] sm:$0xff] %vm212_vm0, %v1134_v48 }
 0x292   : > { %v1136_v0 = vpop.eup %1135 }
 0x293   : > { %820 = vst.msk [vmem:[%s207_s26 + $0x30] sm:$0xff] %vm212_vm0, %v1136_v0 }
 0x294 PF: > { %s16_s17 = sadd.s32 1, %s1215_s17   ;;  %s1473_s12 = smov %s1199_s13 }
 0x295   : > { %p13_p8 = scmp.ge.s32.totalorder %s16_s17, 4   ;;  %s1474_s13 = smov %s1203_s14 }
 0x296   : > { %s1475_s14 = smov %s1292_s24  ;;  %s1476_s15 = smov %s1211_s16 }
 0x297   : > { %s1477_s16 = smov %s1479_s19  ;;  %15 = sbr.rel (!%p13_p8) target bundleno = 4 (0x4), region = 80 }
 0x29c   :  { %843 = vsyncpa [#allocation5], 1 }
 0x29d   :  { %845 = vsyncpa [#allocation5 + $0x1], 1 }

</bundles_post_ra>
